<compile_context>
chip_gen: v5e
topology: v5e:2x2
jax: 0.10.0
libtpu: 0.0.40
codegen_flags: <defaults>
</compile_context>

<pallas_src>
import functools

import numpy as np
import jax
import jax.numpy as jnp
from jax.experimental import pallas as pl
from jax.experimental.pallas import tpu as pltpu

_TWO_PI = float(2.0 * np.pi)
_SUBLANE = 8      # f32 sublane tile
_LANE = 128       # lane tile


def _round_up(v, m):
    return ((v + m - 1) // m) * m


def _choose_tile(dim, unit, max_tile):
    """Largest power-of-two multiple of `unit` (<= max_tile) that divides the
    unit-padded size exactly (no extra padding waste)."""
    padded = _round_up(dim, unit)
    tile = unit
    while tile * 2 <= max_tile and padded % (tile * 2) == 0:
        tile *= 2
    return tile, padded


def _maybe_halve(tile, padded, min_tile):
    half = tile // 2
    if half >= min_tile and padded % half == 0:
        return half
    return tile


# ----------------------------------------------------------------------------
# Glue: trajectory upsampling (torch.nn.functional.interpolate, mode='linear',
# align_corners=True, scale_factor=2, applied along the sample axis).
# ----------------------------------------------------------------------------
def _interpolate_linear_ac(traj, factor=2):
    # traj: (Nc, L, D) -> (Nc, L*factor, D)
    Nc, L, D = traj.shape
    Lout = L * factor
    if L == 1:
        return jnp.broadcast_to(traj, (Nc, Lout, D))
    j = jnp.arange(Lout, dtype=jnp.float32)
    pos = j * (L - 1) / (Lout - 1)          # align_corners=True mapping
    i0 = jnp.clip(jnp.floor(pos).astype(jnp.int32), 0, L - 2)
    frac = pos - i0.astype(jnp.float32)
    lo = traj[:, i0, :]
    hi = traj[:, i0 + 1, :]
    return lo + frac[None, :, None] * (hi - lo)


def get_trajectory(control, current_decim):
    traj = control
    for _ in range(int(round(np.log2(current_decim)))):
        traj = _interpolate_linear_ac(traj, factor=2)
    return traj.reshape(-1, traj.shape[-1])   # (M, D)


# ----------------------------------------------------------------------------
# Kernel 1 (forward, stage A): per image row, 1-D NDFT over the x (W) axis.
#   A[r, m] = sum_w (xr + i*xi)[r, w] * (cos(ax_m*x'_w) - i*sin(ax_m*x'_w))
# grid = (row tiles [parallel], M tiles [parallel], W tiles [contraction]).
# ----------------------------------------------------------------------------
def _fwd_x_kernel(xr_ref, xi_ref, exc_ref, exs_ref, are_ref, aim_ref,
                  acc_re, acc_im):
    @pl.when(pl.program_id(2) == 0)
    def _():
        acc_re[...] = jnp.zeros_like(acc_re)
        acc_im[...] = jnp.zeros_like(acc_im)

    xr = xr_ref[...]
    xi = xi_ref[...]
    exc = exc_ref[...]
    exs = exs_ref[...]
    acc_re[...] += (jnp.dot(xr, exc, preferred_element_type=jnp.float32)
                    + jnp.dot(xi, exs, preferred_element_type=jnp.float32))
    acc_im[...] += (jnp.dot(xi, exc, preferred_element_type=jnp.float32)
                    - jnp.dot(xr, exs, preferred_element_type=jnp.float32))
    # Store the (partial) result on every step — never rely on finalize-only
    # stores (previous version's source of NaNs).
    are_ref[...] = acc_re[...]
    aim_ref[...] = acc_im[...]


# ----------------------------------------------------------------------------
# Kernel 2 (adjoint, stage B'): 1-D adjoint NDFT over samples + magnitude.
#   adj[r, w] = sum_m (U_re + i*U_im)[r, m] * (cos(ax_m*x'_w) + i*sin(ax_m*x'_w))
#   out[r, w] = |adj[r, w]|
# grid = (row tiles [parallel], W tiles [parallel], M tiles [contraction]).
# ----------------------------------------------------------------------------
def _adj_x_kernel(ur_ref, ui_ref, exc_ref, exs_ref, mag_ref, acc_re, acc_im):
    @pl.when(pl.program_id(2) == 0)
    def _():
        acc_re[...] = jnp.zeros_like(acc_re)
        acc_im[...] = jnp.zeros_like(acc_im)

    ur = ur_ref[...]
    ui = ui_ref[...]
    exc = exc_ref[...]
    exs = exs_ref[...]
    acc_re[...] += (jnp.dot(ur, exc, preferred_element_type=jnp.float32)
                    - jnp.dot(ui, exs, preferred_element_type=jnp.float32))
    acc_im[...] += (jnp.dot(ur, exs, preferred_element_type=jnp.float32)
                    + jnp.dot(ui, exc, preferred_element_type=jnp.float32))
    mag_ref[...] = jnp.sqrt(acc_re[...] * acc_re[...] + acc_im[...] * acc_im[...])


# ----------------------------------------------------------------------------
# Wrapper: Model.forward
# ----------------------------------------------------------------------------
@functools.partial(jax.jit, static_argnums=(2, 3, 4, 5, 6))
def model_forward(x, control, current_decim, img_size,
                  tile_rows=512, tile_cols=512, operand_dtype=jnp.float32):
    """x: (B, C, H, W) complex64; control: (Nc, Nctrl, 2); returns (B, C, H, W) f32."""
    B, C, H, W = x.shape
    assert (H, W) == tuple(img_size)
    BC = B * C
    R = BC * H                                       # rows of the 1-D transforms

    traj = get_trajectory(control, current_decim)    # (M, 2)  (kx, ky) in [-0.5, 0.5)
    M = traj.shape[0]

    # Tile sizes / padded extents (lane dims multiples of 128, rows of 8).
    tm, Mp = _choose_tile(M, _LANE, tile_cols)
    tw, Wp = _choose_tile(W, _LANE, tile_cols)
    tr, Rp = _choose_tile(R, _SUBLANE, tile_rows)

    # Keep the parallel grid axes at >= 2 tiles when possible (v7x megacore).
    tr_f, tm_f = tr, tm
    if (Rp // tr_f) * (Mp // tm_f) < 2:
        tm_f = _maybe_halve(tm_f, Mp, _LANE)
    if (Rp // tr_f) * (Mp // tm_f) < 2:
        tr_f = _maybe_halve(tr_f, Rp, _SUBLANE)
    tr_g, tw_g = tr, tw
    if (Rp // tr_g) * (Wp // tw_g) < 2:
        tw_g = _maybe_halve(tw_g, Wp, _LANE)
    if (Rp // tr_g) * (Wp // tw_g) < 2:
        tr_g = _maybe_halve(tr_g, Rp, _SUBLANE)

    # Separable 1-D phase tables: only 2*M*(H+W) transcendentals, built once in
    # XLA.  2*pi is folded into the frequencies; padded samples / pixels are
    # masked to zero so they can never contribute.
    ax = _TWO_PI * jnp.pad(traj[:, 0].astype(jnp.float32), (0, Mp - M))
    ay = _TWO_PI * jnp.pad(traj[:, 1].astype(jnp.float32), (0, Mp - M))
    xprime = jnp.arange(Wp, dtype=jnp.float32) - float(W // 2)
    yprime = jnp.arange(H, dtype=jnp.float32) - float(H // 2)

    mvalid = (jnp.arange(Mp) < M).astype(jnp.float32)        # (Mp,)
    wvalid = (jnp.arange(Wp) < W).astype(jnp.float32)        # (Wp,)
    mask_mw = mvalid[:, None] * wvalid[None, :]

    phase_x = ax[:, None] * xprime[None, :]                  # (Mp, Wp)
    exc_mw = (jnp.cos(phase_x) * mask_mw).astype(operand_dtype)
    exs_mw = (jnp.sin(phase_x) * mask_mw).astype(operand_dtype)
    exc_wm = exc_mw.T                                         # (Wp, Mp) for stage A
    exs_wm = exs_mw.T

    phase_y = yprime[:, None] * ay[None, :]                   # (H, Mp)
    eyc = jnp.cos(phase_y) * mvalid[None, :]
    eys = jnp.sin(phase_y) * mvalid[None, :]

    # Image planes as (rows, W) with zero padding to (Rp, Wp).
    xr = jnp.real(x).reshape(R, W).astype(jnp.float32)
    xi = jnp.imag(x).reshape(R, W).astype(jnp.float32)
    xr_p = jnp.pad(xr, ((0, Rp - R), (0, Wp - W))).astype(operand_dtype)
    xi_p = jnp.pad(xi, ((0, Rp - R), (0, Wp - W))).astype(operand_dtype)

    cparams = pltpu.CompilerParams(
        dimension_semantics=("parallel", "parallel", "arbitrary"),
        vmem_limit_bytes=48 * 1024 * 1024)

    # ---- forward, stage A (Pallas): 1-D NDFT along x --------------------------
    a_re, a_im = pl.pallas_call(
        _fwd_x_kernel,
        out_shape=(jax.ShapeDtypeStruct((Rp, Mp), jnp.float32),
                   jax.ShapeDtypeStruct((Rp, Mp), jnp.float32)),
        grid_spec=pltpu.PrefetchScalarGridSpec(
            num_scalar_prefetch=0,
            grid=(Rp // tr_f, Mp // tm_f, Wp // tw),
            in_specs=[
                pl.BlockSpec((tr_f, tw), lambda i, j, k: (i, k)),      # xr
                pl.BlockSpec((tr_f, tw), lambda i, j, k: (i, k)),      # xi
                pl.BlockSpec((tw, tm_f), lambda i, j, k: (k, j)),      # cos(ax*x')
                pl.BlockSpec((tw, tm_f), lambda i, j, k: (k, j)),      # sin(ax*x')
            ],
            out_specs=[
                pl.BlockSpec((tr_f, tm_f), lambda i, j, k: (i, j)),
                pl.BlockSpec((tr_f, tm_f), lambda i, j, k: (i, j)),
            ],
            scratch_shapes=[pltpu.VMEM((tr_f, tm_f), jnp.float32),
                            pltpu.VMEM((tr_f, tm_f), jnp.float32)],
        ),
        compiler_params=cparams,
    )(xr_p, xi_p, exc_wm, exs_wm)

    # ---- forward, stage B (XLA glue): per-sample weighted reduction over y ----
    a_re3 = a_re[:R].reshape(BC, H, Mp)
    a_im3 = a_im[:R].reshape(BC, H, Mp)
    ks_re = (jnp.einsum('bhm,hm->bm', a_re3, eyc)
             + jnp.einsum('bhm,hm->bm', a_im3, eys))
    ks_im = (jnp.einsum('bhm,hm->bm', a_im3, eyc)
             - jnp.einsum('bhm,hm->bm', a_re3, eys))

    # ---- adjoint, stage A' (XLA glue): per-sample expansion over y ------------
    u_re = ks_re[:, None, :] * eyc[None] - ks_im[:, None, :] * eys[None]
    u_im = ks_re[:, None, :] * eys[None] + ks_im[:, None, :] * eyc[None]
    u_re = jnp.pad(u_re.reshape(R, Mp), ((0, Rp - R), (0, 0))).astype(operand_dtype)
    u_im = jnp.pad(u_im.reshape(R, Mp), ((0, Rp - R), (0, 0))).astype(operand_dtype)

    # ---- adjoint, stage B' (Pallas): 1-D adjoint NDFT along x + magnitude -----
    mag = pl.pallas_call(
        _adj_x_kernel,
        out_shape=jax.ShapeDtypeStruct((Rp, Wp), jnp.float32),
        grid_spec=pltpu.PrefetchScalarGridSpec(
            num_scalar_prefetch=0,
            grid=(Rp // tr_g, Wp // tw_g, Mp // tm),
            in_specs=[
                pl.BlockSpec((tr_g, tm), lambda i, j, k: (i, k)),      # U_re
                pl.BlockSpec((tr_g, tm), lambda i, j, k: (i, k)),      # U_im
                pl.BlockSpec((tm, tw_g), lambda i, j, k: (k, j)),      # cos(ax*x')
                pl.BlockSpec((tm, tw_g), lambda i, j, k: (k, j)),      # sin(ax*x')
            ],
            out_specs=pl.BlockSpec((tr_g, tw_g), lambda i, j, k: (i, j)),
            scratch_shapes=[pltpu.VMEM((tr_g, tw_g), jnp.float32),
                            pltpu.VMEM((tr_g, tw_g), jnp.float32)],
        ),
        compiler_params=cparams,
    )(u_re, u_im, exc_mw, exs_mw)

    # Drop padding, mean-normalise (tiny scalar epilogue in XLA).
    mag = mag[:R, :W]
    out = mag / jnp.mean(mag)
    return out.reshape(B, C, H, W)


# ----------------------------------------------------------------------------
# Dense NDFT reference in plain XLA (correctness checking only).
# ----------------------------------------------------------------------------
def reference_forward(x, control, current_decim, img_size):
    B, C, H, W = x.shape
    N = H * W
    traj = get_trajectory(control, current_decim)
    iy = jnp.arange(H, dtype=jnp.float32) - H // 2
    ix = jnp.arange(W, dtype=jnp.float32) - W // 2
    gy, gx = jnp.meshgrid(iy, ix, indexing="ij")
    gx, gy = gx.ravel(), gy.ravel()
    phi = _TWO_PI * (traj[:, 0:1] * gx[None, :] + traj[:, 1:2] * gy[None, :])
    cos_p, sin_p = jnp.cos(phi), jnp.sin(phi)
    xr = jnp.real(x).reshape(B * C, N).astype(jnp.float32)
    xi = jnp.imag(x).reshape(B * C, N).astype(jnp.float32)
    hp = jax.lax.Precision.HIGHEST
    ks_re = jnp.matmul(xr, cos_p.T, precision=hp) + jnp.matmul(xi, sin_p.T, precision=hp)
    ks_im = jnp.matmul(xi, cos_p.T, precision=hp) - jnp.matmul(xr, sin_p.T, precision=hp)
    adj_re = jnp.matmul(ks_re, cos_p, precision=hp) - jnp.matmul(ks_im, sin_p, precision=hp)
    adj_im = jnp.matmul(ks_re, sin_p, precision=hp) + jnp.matmul(ks_im, cos_p, precision=hp)
    mag = jnp.sqrt(adj_re * adj_re + adj_im * adj_im)
    out = mag / jnp.mean(mag)
    return out.reshape(B, C, H, W)


if __name__ == "__main__":
    # Small, deterministic setup consistent with the module's __init__.
    B, C, H, W = 2, 2, 16, 16          # batch, coils, image size
    Nc, Ns = 4, 32                     # shots, samples per shot
    start_decim = 8

    # Deterministic radial initial trajectory, normalised to [-0.5, 0.5).
    t = np.linspace(-0.5, 0.5, Ns, endpoint=False, dtype=np.float32)
    angles = np.pi * np.arange(Nc, dtype=np.float32) / Nc
    init_traj = np.stack(
        [np.outer(np.cos(angles), t), np.outer(np.sin(angles), t)], axis=-1
    ).astype(np.float32)                                   # (Nc, Ns, 2)

    # self.control = initial_trajectory[:, ::start_decim]  -> (Nc, Ns//8, 2)
    control = jnp.asarray(init_traj[:, ::start_decim])

    key = jax.random.PRNGKey(0)
    k1, k2 = jax.random.split(key)
    x = (jax.random.normal(k1, (B, C, H, W), dtype=jnp.float32)
         + 1j * jax.random.normal(k2, (B, C, H, W), dtype=jnp.float32))

    out = model_forward(x, control, start_decim, (H, W))
    out = jax.block_until_ready(out)

    assert out.shape == (B, C, H, W)
    assert bool(jnp.isfinite(out).all())
    # Normalisation invariant: mean(out) == 1
    assert abs(float(jnp.mean(out)) - 1.0) < 1e-3

    # Cross-check against the dense-NDFT XLA reference.
    ref = reference_forward(x, control, start_decim, (H, W))
    max_err = float(jnp.max(jnp.abs(out - ref)))
    assert max_err < 5e-2, f"kernel vs dense-NDFT reference mismatch: {max_err}"

    print("KERNEL_OK")
</pallas_src>

<mosaic_0001>
module attributes {stable_mosaic.version = 11 : i64} {
  func.func @_fwd_x_kernel(%arg0: i32, %arg1: i32, %arg2: i32, %arg3: memref<32x128xf32, #tpu.memory_space<vmem>>, %arg4: memref<32x128xf32, #tpu.memory_space<vmem>>, %arg5: memref<128x128xf32, #tpu.memory_space<vmem>>, %arg6: memref<128x128xf32, #tpu.memory_space<vmem>>, %arg7: memref<32x128xf32, #tpu.memory_space<vmem>>, %arg8: memref<32x128xf32, #tpu.memory_space<vmem>>, %arg9: memref<32x128xf32, #tpu.memory_space<vmem>>, %arg10: memref<32x128xf32, #tpu.memory_space<vmem>>) attributes {dimension_semantics = [#tpu.dimension_semantics<parallel>, #tpu.dimension_semantics<parallel>, #tpu.dimension_semantics<arbitrary>], iteration_bounds = array<i64: 2, 1, 1>, scalar_prefetch = 0 : i64, scratch_operands = 2 : i64, tpu.core_type = #tpu.core_type<tc>, window_params = [{transform_indices = @transform_0, window_bounds = array<i64: 32, 128>}, {transform_indices = @transform_1, window_bounds = array<i64: 32, 128>}, {transform_indices = @transform_2, window_bounds = array<i64: 128, 128>}, {transform_indices = @transform_3, window_bounds = array<i64: 128, 128>}, {transform_indices = @transform_4, window_bounds = array<i64: 32, 128>}, {transform_indices = @transform_5, window_bounds = array<i64: 32, 128>}]} {
    %c0_i32 = arith.constant 0 : i32
    %0 = arith.cmpi eq, %arg2, %c0_i32 : i32
    %1 = arith.extui %0 : i1 to i32
    %c0_i32_0 = arith.constant 0 : i32
    %2 = arith.cmpi ne, %1, %c0_i32_0 : i32
    scf.if %2 {
      %cst_27 = arith.constant 0.000000e+00 : f32
      %23 = vector.broadcast %cst_27 : f32 to vector<32x128xf32>
      %c0_28 = arith.constant 0 : index
      %c0_29 = arith.constant 0 : index
      %24 = vector.load %arg9[%c0_28, %c0_29] : memref<32x128xf32, #tpu.memory_space<vmem>>, vector<32x128xf32>
      tpu.vector_store %arg9[%c0_28, %c0_29], %23 {strides = array<i32>} : memref<32x128xf32, #tpu.memory_space<vmem>>, vector<32x128xf32>,
      %cst_30 = arith.constant 0.000000e+00 : f32
      %25 = vector.broadcast %cst_30 : f32 to vector<32x128xf32>
      %c0_31 = arith.constant 0 : index
      %c0_32 = arith.constant 0 : index
      %26 = vector.load %arg10[%c0_31, %c0_32] : memref<32x128xf32, #tpu.memory_space<vmem>>, vector<32x128xf32>
      tpu.vector_store %arg10[%c0_31, %c0_32], %25 {strides = array<i32>} : memref<32x128xf32, #tpu.memory_space<vmem>>, vector<32x128xf32>,
    } else {
    }
    %c0 = arith.constant 0 : index
    %c0_1 = arith.constant 0 : index
    %3 = vector.load %arg3[%c0, %c0_1] : memref<32x128xf32, #tpu.memory_space<vmem>>, vector<32x128xf32>
    %c0_2 = arith.constant 0 : index
    %c0_3 = arith.constant 0 : index
    %4 = vector.load %arg4[%c0_2, %c0_3] : memref<32x128xf32, #tpu.memory_space<vmem>>, vector<32x128xf32>
    %c0_4 = arith.constant 0 : index
    %c0_5 = arith.constant 0 : index
    %5 = vector.load %arg5[%c0_4, %c0_5] : memref<128x128xf32, #tpu.memory_space<vmem>>, vector<128x128xf32>
    %c0_6 = arith.constant 0 : index
    %c0_7 = arith.constant 0 : index
    %6 = vector.load %arg6[%c0_6, %c0_7] : memref<128x128xf32, #tpu.memory_space<vmem>>, vector<128x128xf32>
    %c0_8 = arith.constant 0 : index
    %c0_9 = arith.constant 0 : index
    %7 = vector.load %arg9[%c0_8, %c0_9] : memref<32x128xf32, #tpu.memory_space<vmem>>, vector<32x128xf32>
    %cst = arith.constant dense<0.000000e+00> : vector<32x128xf32>
    %8 = tpu.matmul %3, %5, %cst {dimension_numbers = #tpu.dot_dimension_numbers<[1], [0], [0], [1], [0, 0, 1, 1], [], []>} : vector<32x128xf32>, vector<128x128xf32>, vector<32x128xf32> -> vector<32x128xf32>
    %cst_10 = arith.constant dense<0.000000e+00> : vector<32x128xf32>
    %9 = tpu.matmul %4, %6, %cst_10 {dimension_numbers = #tpu.dot_dimension_numbers<[1], [0], [0], [1], [0, 0, 1, 1], [], []>} : vector<32x128xf32>, vector<128x128xf32>, vector<32x128xf32> -> vector<32x128xf32>
    %10 = arith.addf %8, %9 : vector<32x128xf32>
    %11 = arith.addf %7, %10 : vector<32x128xf32>
    %c0_11 = arith.constant 0 : index
    %c0_12 = arith.constant 0 : index
    %12 = vector.load %arg9[%c0_11, %c0_12] : memref<32x128xf32, #tpu.memory_space<vmem>>, vector<32x128xf32>
    tpu.vector_store %arg9[%c0_11, %c0_12], %11 {strides = array<i32>} : memref<32x128xf32, #tpu.memory_space<vmem>>, vector<32x128xf32>,
    %c0_13 = arith.constant 0 : index
    %c0_14 = arith.constant 0 : index
    %13 = vector.load %arg10[%c0_13, %c0_14] : memref<32x128xf32, #tpu.memory_space<vmem>>, vector<32x128xf32>
    %cst_15 = arith.constant dense<0.000000e+00> : vector<32x128xf32>
    %14 = tpu.matmul %4, %5, %cst_15 {dimension_numbers = #tpu.dot_dimension_numbers<[1], [0], [0], [1], [0, 0, 1, 1], [], []>} : vector<32x128xf32>, vector<128x128xf32>, vector<32x128xf32> -> vector<32x128xf32>
    %cst_16 = arith.constant dense<0.000000e+00> : vector<32x128xf32>
    %15 = tpu.matmul %3, %6, %cst_16 {dimension_numbers = #tpu.dot_dimension_numbers<[1], [0], [0], [1], [0, 0, 1, 1], [], []>} : vector<32x128xf32>, vector<128x128xf32>, vector<32x128xf32> -> vector<32x128xf32>
    %16 = arith.subf %14, %15 : vector<32x128xf32>
    %17 = arith.addf %13, %16 : vector<32x128xf32>
    %c0_17 = arith.constant 0 : index
    %c0_18 = arith.constant 0 : index
    %18 = vector.load %arg10[%c0_17, %c0_18] : memref<32x128xf32, #tpu.memory_space<vmem>>, vector<32x128xf32>
    tpu.vector_store %arg10[%c0_17, %c0_18], %17 {strides = array<i32>} : memref<32x128xf32, #tpu.memory_space<vmem>>, vector<32x128xf32>,
    %c0_19 = arith.constant 0 : index
    %c0_20 = arith.constant 0 : index
    %19 = vector.load %arg9[%c0_19, %c0_20] : memref<32x128xf32, #tpu.memory_space<vmem>>, vector<32x128xf32>
    %c0_21 = arith.constant 0 : index
    %c0_22 = arith.constant 0 : index
    %20 = vector.load %arg7[%c0_21, %c0_22] : memref<32x128xf32, #tpu.memory_space<vmem>>, vector<32x128xf32>
    tpu.vector_store %arg7[%c0_21, %c0_22], %19 {strides = array<i32>} : memref<32x128xf32, #tpu.memory_space<vmem>>, vector<32x128xf32>,
    %c0_23 = arith.constant 0 : index
    %c0_24 = arith.constant 0 : index
    %21 = vector.load %arg10[%c0_23, %c0_24] : memref<32x128xf32, #tpu.memory_space<vmem>>, vector<32x128xf32>
    %c0_25 = arith.constant 0 : index
    %c0_26 = arith.constant 0 : index
    %22 = vector.load %arg8[%c0_25, %c0_26] : memref<32x128xf32, #tpu.memory_space<vmem>>, vector<32x128xf32>
    tpu.vector_store %arg8[%c0_25, %c0_26], %21 {strides = array<i32>} : memref<32x128xf32, #tpu.memory_space<vmem>>, vector<32x128xf32>,
    return
  }
  func.func @transform_0(%arg0: i32, %arg1: i32, %arg2: i32) -> (i32, i32) {
    %c0_i32 = arith.constant 0 : i32
    return %arg0, %arg2 : i32, i32
  }
  func.func @transform_1(%arg0: i32, %arg1: i32, %arg2: i32) -> (i32, i32) {
    %c0_i32 = arith.constant 0 : i32
    return %arg0, %arg2 : i32, i32
  }
  func.func @transform_2(%arg0: i32, %arg1: i32, %arg2: i32) -> (i32, i32) {
    %c0_i32 = arith.constant 0 : i32
    return %arg2, %arg1 : i32, i32
  }
  func.func @transform_3(%arg0: i32, %arg1: i32, %arg2: i32) -> (i32, i32) {
    %c0_i32 = arith.constant 0 : i32
    return %arg2, %arg1 : i32, i32
  }
  func.func @transform_4(%arg0: i32, %arg1: i32, %arg2: i32) -> (i32, i32) {
    %c0_i32 = arith.constant 0 : i32
    return %arg0, %arg1 : i32, i32
  }
  func.func @transform_5(%arg0: i32, %arg1: i32, %arg2: i32) -> (i32, i32) {
    %c0_i32 = arith.constant 0 : i32
    return %arg0, %arg1 : i32, i32
  }
}

module attributes {stable_mosaic.version = 11 : i64} {
  func.func @_adj_x_kernel(%arg0: i32, %arg1: i32, %arg2: i32, %arg3: memref<32x128xf32, #tpu.memory_space<vmem>>, %arg4: memref<32x128xf32, #tpu.memory_space<vmem>>, %arg5: memref<128x128xf32, #tpu.memory_space<vmem>>, %arg6: memref<128x128xf32, #tpu.memory_space<vmem>>, %arg7: memref<32x128xf32, #tpu.memory_space<vmem>>, %arg8: memref<32x128xf32, #tpu.memory_space<vmem>>, %arg9: memref<32x128xf32, #tpu.memory_space<vmem>>) attributes {dimension_semantics = [#tpu.dimension_semantics<parallel>, #tpu.dimension_semantics<parallel>, #tpu.dimension_semantics<arbitrary>], iteration_bounds = array<i64: 2, 1, 1>, scalar_prefetch = 0 : i64, scratch_operands = 2 : i64, tpu.core_type = #tpu.core_type<tc>, window_params = [{transform_indices = @transform_0, window_bounds = array<i64: 32, 128>}, {transform_indices = @transform_1, window_bounds = array<i64: 32, 128>}, {transform_indices = @transform_2, window_bounds = array<i64: 128, 128>}, {transform_indices = @transform_3, window_bounds = array<i64: 128, 128>}, {transform_indices = @transform_4, window_bounds = array<i64: 32, 128>}]} {
    %c0_i32 = arith.constant 0 : i32
    %0 = arith.cmpi eq, %arg2, %c0_i32 : i32
    %1 = arith.extui %0 : i1 to i32
    %c0_i32_0 = arith.constant 0 : i32
    %2 = arith.cmpi ne, %1, %c0_i32_0 : i32
    scf.if %2 {
      %cst_29 = arith.constant 0.000000e+00 : f32
      %28 = vector.broadcast %cst_29 : f32 to vector<32x128xf32>
      %c0_30 = arith.constant 0 : index
      %c0_31 = arith.constant 0 : index
      %29 = vector.load %arg8[%c0_30, %c0_31] : memref<32x128xf32, #tpu.memory_space<vmem>>, vector<32x128xf32>
      tpu.vector_store %arg8[%c0_30, %c0_31], %28 {strides = array<i32>} : memref<32x128xf32, #tpu.memory_space<vmem>>, vector<32x128xf32>,
      %cst_32 = arith.constant 0.000000e+00 : f32
      %30 = vector.broadcast %cst_32 : f32 to vector<32x128xf32>
      %c0_33 = arith.constant 0 : index
      %c0_34 = arith.constant 0 : index
      %31 = vector.load %arg9[%c0_33, %c0_34] : memref<32x128xf32, #tpu.memory_space<vmem>>, vector<32x128xf32>
      tpu.vector_store %arg9[%c0_33, %c0_34], %30 {strides = array<i32>} : memref<32x128xf32, #tpu.memory_space<vmem>>, vector<32x128xf32>,
    } else {
    }
    %c0 = arith.constant 0 : index
    %c0_1 = arith.constant 0 : index
    %3 = vector.load %arg3[%c0, %c0_1] : memref<32x128xf32, #tpu.memory_space<vmem>>, vector<32x128xf32>
    %c0_2 = arith.constant 0 : index
    %c0_3 = arith.constant 0 : index
    %4 = vector.load %arg4[%c0_2, %c0_3] : memref<32x128xf32, #tpu.memory_space<vmem>>, vector<32x128xf32>
    %c0_4 = arith.constant 0 : index
    %c0_5 = arith.constant 0 : index
    %5 = vector.load %arg5[%c0_4, %c0_5] : memref<128x128xf32, #tpu.memory_space<vmem>>, vector<128x128xf32>
    %c0_6 = arith.constant 0 : index
    %c0_7 = arith.constant 0 : index
    %6 = vector.load %arg6[%c0_6, %c0_7] : memref<128x128xf32, #tpu.memory_space<vmem>>, vector<128x128xf32>
    %c0_8 = arith.constant 0 : index
    %c0_9 = arith.constant 0 : index
    %7 = vector.load %arg8[%c0_8, %c0_9] : memref<32x128xf32, #tpu.memory_space<vmem>>, vector<32x128xf32>
    %cst = arith.constant dense<0.000000e+00> : vector<32x128xf32>
    %8 = tpu.matmul %3, %5, %cst {dimension_numbers = #tpu.dot_dimension_numbers<[1], [0], [0], [1], [0, 0, 1, 1], [], []>} : vector<32x128xf32>, vector<128x128xf32>, vector<32x128xf32> -> vector<32x128xf32>
    %cst_10 = arith.constant dense<0.000000e+00> : vector<32x128xf32>
    %9 = tpu.matmul %4, %6, %cst_10 {dimension_numbers = #tpu.dot_dimension_numbers<[1], [0], [0], [1], [0, 0, 1, 1], [], []>} : vector<32x128xf32>, vector<128x128xf32>, vector<32x128xf32> -> vector<32x128xf32>
    %10 = arith.subf %8, %9 : vector<32x128xf32>
    %11 = arith.addf %7, %10 : vector<32x128xf32>
    %c0_11 = arith.constant 0 : index
    %c0_12 = arith.constant 0 : index
    %12 = vector.load %arg8[%c0_11, %c0_12] : memref<32x128xf32, #tpu.memory_space<vmem>>, vector<32x128xf32>
    tpu.vector_store %arg8[%c0_11, %c0_12], %11 {strides = array<i32>} : memref<32x128xf32, #tpu.memory_space<vmem>>, vector<32x128xf32>,
    %c0_13 = arith.constant 0 : index
    %c0_14 = arith.constant 0 : index
    %13 = vector.load %arg9[%c0_13, %c0_14] : memref<32x128xf32, #tpu.memory_space<vmem>>, vector<32x128xf32>
    %cst_15 = arith.constant dense<0.000000e+00> : vector<32x128xf32>
    %14 = tpu.matmul %3, %6, %cst_15 {dimension_numbers = #tpu.dot_dimension_numbers<[1], [0], [0], [1], [0, 0, 1, 1], [], []>} : vector<32x128xf32>, vector<128x128xf32>, vector<32x128xf32> -> vector<32x128xf32>
    %cst_16 = arith.constant dense<0.000000e+00> : vector<32x128xf32>
    %15 = tpu.matmul %4, %5, %cst_16 {dimension_numbers = #tpu.dot_dimension_numbers<[1], [0], [0], [1], [0, 0, 1, 1], [], []>} : vector<32x128xf32>, vector<128x128xf32>, vector<32x128xf32> -> vector<32x128xf32>
    %16 = arith.addf %14, %15 : vector<32x128xf32>
    %17 = arith.addf %13, %16 : vector<32x128xf32>
    %c0_17 = arith.constant 0 : index
    %c0_18 = arith.constant 0 : index
    %18 = vector.load %arg9[%c0_17, %c0_18] : memref<32x128xf32, #tpu.memory_space<vmem>>, vector<32x128xf32>
    tpu.vector_store %arg9[%c0_17, %c0_18], %17 {strides = array<i32>} : memref<32x128xf32, #tpu.memory_space<vmem>>, vector<32x128xf32>,
    %c0_19 = arith.constant 0 : index
    %c0_20 = arith.constant 0 : index
    %19 = vector.load %arg8[%c0_19, %c0_20] : memref<32x128xf32, #tpu.memory_space<vmem>>, vector<32x128xf32>
    %c0_21 = arith.constant 0 : index
    %c0_22 = arith.constant 0 : index
    %20 = vector.load %arg8[%c0_21, %c0_22] : memref<32x128xf32, #tpu.memory_space<vmem>>, vector<32x128xf32>
    %21 = arith.mulf %19, %20 : vector<32x128xf32>
    %c0_23 = arith.constant 0 : index
    %c0_24 = arith.constant 0 : index
    %22 = vector.load %arg9[%c0_23, %c0_24] : memref<32x128xf32, #tpu.memory_space<vmem>>, vector<32x128xf32>
    %c0_25 = arith.constant 0 : index
    %c0_26 = arith.constant 0 : index
    %23 = vector.load %arg9[%c0_25, %c0_26] : memref<32x128xf32, #tpu.memory_space<vmem>>, vector<32x128xf32>
    %24 = arith.mulf %22, %23 : vector<32x128xf32>
    %25 = arith.addf %21, %24 : vector<32x128xf32>
    %26 = math.sqrt %25 : vector<32x128xf32>
    %c0_27 = arith.constant 0 : index
    %c0_28 = arith.constant 0 : index
    %27 = vector.load %arg7[%c0_27, %c0_28] : memref<32x128xf32, #tpu.memory_space<vmem>>, vector<32x128xf32>
    tpu.vector_store %arg7[%c0_27, %c0_28], %26 {strides = array<i32>} : memref<32x128xf32, #tpu.memory_space<vmem>>, vector<32x128xf32>,
    return
  }
  func.func @transform_0(%arg0: i32, %arg1: i32, %arg2: i32) -> (i32, i32) {
    %c0_i32 = arith.constant 0 : i32
    return %arg0, %arg2 : i32, i32
  }
  func.func @transform_1(%arg0: i32, %arg1: i32, %arg2: i32) -> (i32, i32) {
    %c0_i32 = arith.constant 0 : i32
    return %arg0, %arg2 : i32, i32
  }
  func.func @transform_2(%arg0: i32, %arg1: i32, %arg2: i32) -> (i32, i32) {
    %c0_i32 = arith.constant 0 : i32
    return %arg2, %arg1 : i32, i32
  }
  func.func @transform_3(%arg0: i32, %arg1: i32, %arg2: i32) -> (i32, i32) {
    %c0_i32 = arith.constant 0 : i32
    return %arg2, %arg1 : i32, i32
  }
  func.func @transform_4(%arg0: i32, %arg1: i32, %arg2: i32) -> (i32, i32) {
    %c0_i32 = arith.constant 0 : i32
    return %arg0, %arg1 : i32, i32
  }
}

</mosaic_0001>

<bundles_post_ra>
// kernel: custom-call
= control target key start
LH: loop header
LB: loop body
LE: loop exit
PB: predicated region body
PF: predicated region fallthrough
CT: control target
= control target key end

     0   :  { %2 = vsyncpa [#allocation0], 0  ;;  %s55_s0 = inlined_call_operand.hbm [shape: c64[2,2,16,16], index: 0, kind: input, shape index: {}]   ;;  %s56_s1 = inlined_call_operand.vmem [shape: f32[2,2,16,16], index: 1, kind: output, shape index: {}]  }
   0x1   :  { %s4_s8 = sshll.u32 %s55_s0, 4  ;;  %s6_s11 = sshll.u32 %s56_s1, 4  ;;  %s5_s8 = int_to_ptr.hbm [resolvable:$true] %s4_s8  ;;  %s7_s11 = int_to_ptr.vmem [resolvable:$true] %s6_s11 }
   0x2   :  { %9 = dma.hbm_to_vmem [thread:$0]  %s5_s8, 1024, %s7_s11, [#allocation0] }
   0x3   :  { %37 = dma.done.wait [#allocation0], 1024  }
   0x4   :  { %38 = vsyncadd [#allocation0], 4294966272 }
   0x5   :  { %12 = vsyncpa [#allocation0], 1 }

// kernel: custom-call.1
= control target key start
LH: loop header
LB: loop body
LE: loop exit
PB: predicated region body
PF: predicated region fallthrough
CT: control target
= control target key end

     0   :  { %s56_s0 = inlined_call_operand.hbm [shape: c64[2,2,16,16], index: 0, kind: input, shape index: {}]   ;;  %s57_s1 = inlined_call_operand.vmem [shape: f32[2,2,16,16], index: 1, kind: output, shape index: {}]  }
   0x1   :  { %s2_s8 = scalar_lea.hbm %s56_s0, 64 }
   0x2   :  { %3 = vsyncpa [#allocation0], 0  ;;  %s5_s9 = sshll.u32 %s2_s8, 4  ;;  %s7_s12 = sshll.u32 %s57_s1, 4  ;;  %s6_s9 = int_to_ptr.hbm [resolvable:$true] %s5_s9  ;;  %s8_s12 = int_to_ptr.vmem [resolvable:$true] %s7_s12 }
   0x3   :  { %10 = dma.hbm_to_vmem [thread:$0]  %s6_s9, 1024, %s8_s12, [#allocation0] }
   0x4   :  { %38 = dma.done.wait [#allocation0], 1024  }
   0x5   :  { %39 = vsyncadd [#allocation0], 4294966272 }
   0x6   :  { %13 = vsyncpa [#allocation0], 1 }

// kernel: model_forward.3
= control target key start
LH: loop header
LB: loop body
LE: loop exit
PB: predicated region body
PF: predicated region fallthrough
CT: control target
= control target key end

     0   :  { %s834_s15 = smov 0   ;;  %s836_s16 = smov 0   ;;  %s992_s0 = inlined_call_operand.vmem [shape: f32[64,128], index: 0, kind: input, shape index: {}]   ;;  %s993_s1 = inlined_call_operand.vmem [shape: f32[64,128], index: 1, kind: input, shape index: {}]   ;;  %s994_s2 = inlined_call_operand.vmem [shape: f32[128,128], index: 2, kind: input, shape index: {}]   ;;  %s995_s3 = inlined_call_operand.vmem [shape: f32[128,128], index: 3, kind: input, shape index: {}]   ;;  %s996_s4 = inlined_call_operand.vmem [shape: f32[64,128], index: 4, kind: output, shape index: {}]  }
   0x1   :  { %s838_s17 = smov 0  }
   0x2 LB: > { %s33_s18 = sadd.s32 1, %s803_s16  ;;  %p744_p0 = scmp.ge.s32.totalorder %s807_s17, 1  ;;  %s807_s17 = sphi %s838_s17, %s14_s17   ;;  %s803_s16 = sphi %s836_s16, %s998_s16   ;;  %s799_s15 = sphi %s834_s15, %s997_s15  }
   0x3   : > { %p35_p1 = scmp.ge.s32.totalorder %s33_s18, 2  ;;  %p237_p2 = scmp.lt.s32.totalorder %s807_s17, 3 }
   0x5   : > { %s1000_s18 = smov (%p35_p1, %s33_s18), 0  ;;  %p238_p3 = pnand %p744_p0, %p237_p2 }
   0x6   : > { %s745_s29 = sshll.u32 (!%p238_p3), %s799_s15, 2 }
   0x7   : > { %241 = sbr.rel (%p238_p3) target bundleno = 229 (0xe5), region = 36  ;;  %p294_p4 = scmp.lt.s32.totalorder (!%p238_p3), %s745_s29, 7 }
   0xc   : > { %v373_v0 = vld [vmem:[%s994_s2 + $0x78] sm:$0xff]  ;;  %v372_v2 = vld [vmem:[%s994_s2 + $0x70] sm:$0xff]  ;;  %v371_v4 = vld [vmem:[%s994_s2 + $0x68] sm:$0xff]  ;;  %s1002_s29 = smov (!%p294_p4, %s745_s29), 7 }
   0xd   : > { %v389_v1 = vld [vmem:[%s995_s3 + $0x78] sm:$0xff]  ;;  %468 = vmatpush.msra.mxu2 %v373_v0  ;;  %v388_v3 = vld [vmem:[%s995_s3 + $0x70] sm:$0xff]  ;;  %v387_v5 = vld [vmem:[%s995_s3 + $0x68] sm:$0xff]  ;;  %394 = vmatpush.msra.mxu0 %v373_v0  ;;  %s933_s27 = sshll.u32 %s1002_s29, 3 }
   0xe   : > { %497 = vmatpush.msra.mxu3 %v389_v1  ;;  %423 = vmatpush.msra.mxu1 %v389_v1  ;;  %v370_v6 = vld [vmem:[%s994_s2 + $0x60] sm:$0xff]  ;;  %v369_v8 = vld [vmem:[%s994_s2 + $0x58] sm:$0xff]  ;;  %v368_v10 = vld [vmem:[%s994_s2 + $0x50] sm:$0xff]  ;;  %s951_s11 = scalar_lea.vmem %s993_s1, %s933_s27  ;;  %s957_s14 = scalar_lea.vmem %s992_s0, %s933_s27 }
   0xf   : > { %469 = vmatpush.msra.mxu2 %v372_v2  ;;  %v386_v7 = vld [vmem:[%s995_s3 + $0x60] sm:$0xff]  ;;  %395 = vmatpush.msra.mxu0 %v372_v2  ;;  %v385_v9 = vld [vmem:[%s995_s3 + $0x58] sm:$0xff]  ;;  %v384_v11 = vld [vmem:[%s995_s3 + $0x50] sm:$0xff]  ;;  %s977_s25 = scalar_lea.vmem %s996_s4, %s933_s27 }
  0x10   : > { %498 = vmatpush.msra.mxu3 %v388_v3  ;;  %424 = vmatpush.msra.mxu1 %v388_v3  ;;  %v367_v12 = vld [vmem:[%s994_s2 + $0x48] sm:$0xff]  ;;  %v366_v14 = vld [vmem:[%s994_s2 + $0x40] sm:$0xff]  ;;  %v365_v16 = vld [vmem:[%s994_s2 + $0x38] sm:$0xff] }
  0x11   : > { %470 = vmatpush.msra.mxu2 %v371_v4  ;;  %396 = vmatpush.msra.mxu0 %v371_v4  ;;  %v383_v13 = vld [vmem:[%s995_s3 + $0x48] sm:$0xff]  ;;  %v382_v15 = vld [vmem:[%s995_s3 + $0x40] sm:$0xff]  ;;  %v381_v17 = vld [vmem:[%s995_s3 + $0x38] sm:$0xff] }
  0x12   : > { %499 = vmatpush.msra.mxu3 %v387_v5  ;;  %425 = vmatpush.msra.mxu1 %v387_v5  ;;  %v364_v18 = vld [vmem:[%s994_s2 + $0x30] sm:$0xff]  ;;  %v363_v20 = vld [vmem:[%s994_s2 + $0x28] sm:$0xff]  ;;  %v362_v22 = vld [vmem:[%s994_s2 + $0x20] sm:$0xff] }
  0x13   : > { %471 = vmatpush.msra.mxu2 %v370_v6  ;;  %397 = vmatpush.msra.mxu0 %v370_v6  ;;  %v380_v19 = vld [vmem:[%s995_s3 + $0x30] sm:$0xff]  ;;  %v379_v21 = vld [vmem:[%s995_s3 + $0x28] sm:$0xff]  ;;  %v378_v23 = vld [vmem:[%s995_s3 + $0x20] sm:$0xff] }
  0x14   : > { %500 = vmatpush.msra.mxu3 %v386_v7  ;;  %426 = vmatpush.msra.mxu1 %v386_v7  ;;  %v361_v24 = vld [vmem:[%s994_s2 + $0x18] sm:$0xff]  ;;  %v360_v26 = vld [vmem:[%s994_s2 + $0x10] sm:$0xff]  ;;  %v359_v28 = vld [vmem:[%s994_s2 + $0x8] sm:$0xff] }
  0x15   : > { %472 = vmatpush.msra.mxu2 %v369_v8  ;;  %398 = vmatpush.msra.mxu0 %v369_v8  ;;  %v377_v25 = vld [vmem:[%s995_s3 + $0x18] sm:$0xff]  ;;  %v376_v27 = vld [vmem:[%s995_s3 + $0x10] sm:$0xff]  ;;  %v375_v29 = vld [vmem:[%s995_s3 + $0x8] sm:$0xff] }
  0x16   : > { %501 = vmatpush.msra.mxu3 %v385_v9  ;;  %427 = vmatpush.msra.mxu1 %v385_v9  ;;  %v358_v30 = vld [vmem:[%s994_s2] sm:$0xff]  ;;  %v355_v34 = vld [vmem:[%s951_s11 + $0x8] sm:$0xff]  ;;  %v356_v36 = vld [vmem:[%s951_s11 + $0x10] sm:$0xff] }
  0x17   : > { %473 = vmatpush.msra.mxu2 %v368_v10  ;;  %399 = vmatpush.msra.mxu0 %v368_v10  ;;  %v374_v31 = vld [vmem:[%s995_s3] sm:$0xff]  ;;  %v351_v35 = vld [vmem:[%s957_s14 + $0x8] sm:$0xff]  ;;  %v352_v37 = vld [vmem:[%s957_s14 + $0x10] sm:$0xff] }
  0x18   : > { %502 = vmatpush.msra.mxu3 %v384_v11  ;;  %428 = vmatpush.msra.mxu1 %v384_v11  ;;  %v354_v32 = vld [vmem:[%s951_s11] sm:$0xff]  ;;  %v357_v38 = vld [vmem:[%s951_s11 + $0x18] sm:$0xff] }
  0x19   : > { %474 = vmatpush.msra.mxu2 %v367_v12  ;;  %400 = vmatpush.msra.mxu0 %v367_v12  ;;  %v350_v33 = vld [vmem:[%s957_s14] sm:$0xff]  ;;  %v353_v39 = vld [vmem:[%s957_s14 + $0x18] sm:$0xff] }
  0x1a   : > { %503 = vmatpush.msra.mxu3 %v383_v13  ;;  %429 = vmatpush.msra.mxu1 %v383_v13 }
  0x1b   : > { %475 = vmatpush.msra.mxu2 %v366_v14  ;;  %401 = vmatpush.msra.mxu0 %v366_v14 }
  0x1c   : > { %504 = vmatpush.msra.mxu3 %v382_v15  ;;  %430 = vmatpush.msra.mxu1 %v382_v15 }
  0x1d   : > { %476 = vmatpush.msra.mxu2 %v365_v16  ;;  %402 = vmatpush.msra.mxu0 %v365_v16 }
  0x1e   : > { %505 = vmatpush.msra.mxu3 %v381_v17  ;;  %431 = vmatpush.msra.mxu1 %v381_v17 }
  0x1f   : > { %477 = vmatpush.msra.mxu2 %v364_v18  ;;  %403 = vmatpush.msra.mxu0 %v364_v18 }
  0x20   : > { %506 = vmatpush.msra.mxu3 %v380_v19  ;;  %432 = vmatpush.msra.mxu1 %v380_v19 }
  0x21   : > { %478 = vmatpush.msra.mxu2 %v363_v20  ;;  %404 = vmatpush.msra.mxu0 %v363_v20 }
  0x22   : > { %507 = vmatpush.msra.mxu3 %v379_v21  ;;  %433 = vmatpush.msra.mxu1 %v379_v21 }
  0x23   : > { %479 = vmatpush.msra.mxu2 %v362_v22  ;;  %405 = vmatpush.msra.mxu0 %v362_v22 }
  0x24   : > { %508 = vmatpush.msra.mxu3 %v378_v23  ;;  %434 = vmatpush.msra.mxu1 %v378_v23 }
  0x25   : > { %480 = vmatpush.msra.mxu2 %v361_v24  ;;  %406 = vmatpush.msra.mxu0 %v361_v24 }
  0x26   : > { %509 = vmatpush.msra.mxu3 %v377_v25  ;;  %435 = vmatpush.msra.mxu1 %v377_v25 }
  0x27   : > { %481 = vmatpush.msra.mxu2 %v360_v26  ;;  %407 = vmatpush.msra.mxu0 %v360_v26 }
  0x28   : > { %510 = vmatpush.msra.mxu3 %v376_v27  ;;  %436 = vmatpush.msra.mxu1 %v376_v27 }
  0x29   : > { %482 = vmatpush.msra.mxu2 %v359_v28  ;;  %408 = vmatpush.msra.mxu0 %v359_v28 }
  0x2a   : > { %511 = vmatpush.msra.mxu3 %v375_v29  ;;  %437 = vmatpush.msra.mxu1 %v375_v29 }
  0x2b   : > { %483 = vmatpush.msra.mxu2 %v358_v30  ;;  %409 = vmatpush.msra.mxu0 %v358_v30 }
  0x2c   : > { %512 = vmatpush.msra.mxu3 %v374_v31  ;;  %484 = vmatmul.f32.vlgmr.msra.gmra.mxu2 %v354_v32 }
  0x2d   : > { %513 = vmatmul.f32.vlgmr.msra.gmra.mxu3 %v350_v33  ;;  %438 = vmatpush.msra.mxu1 %v374_v31 }
  0x2e   : > { %410 = vmatmul.f32.vlgmr.msra.gmra.mxu0 %v350_v33  ;;  %439 = vmatmul.f32.vlgmr.msra.gmra.mxu1 %v354_v32 }
  0x34   : > { %487 = vmatmul.f32.gmra.mxu2 %v355_v34 }
  0x35   : > { %516 = vmatmul.f32.gmra.mxu3 %v351_v35 }
  0x36   : > { %413 = vmatmul.f32.gmra.mxu0 %v351_v35  ;;  %442 = vmatmul.f32.gmra.mxu1 %v355_v34 }
  0x3c   : > { %490 = vmatmul.f32.gmra.mxu2 %v356_v36 }
  0x3d   : > { %519 = vmatmul.f32.gmra.mxu3 %v352_v37 }
  0x3e   : > { %416 = vmatmul.f32.gmra.mxu0 %v352_v37  ;;  %445 = vmatmul.f32.gmra.mxu1 %v356_v36 }
  0x44   : > { %493 = vmatmul.f32.gmra.mxu2 %v357_v38 }
  0x45   : > { %522 = vmatmul.f32.gmra.mxu3 %v353_v39 }
  0x46   : > { %419 = vmatmul.f32.gmra.mxu0 %v353_v39  ;;  %448 = vmatmul.f32.gmra.mxu1 %v357_v38 }
  0xab   : > { %v411_v40 = vpop.f32.mrf.mxu0  ;;  %v440_v41 = vpop.f32.mrf.mxu1 }
  0xac   : > { %v452_v42 = vsub.f32 %v411_v40, %v440_v41 }
  0xae   : > { %v538_v45 = vmul.f32 %v452_v42, %v452_v42 }
  0xaf   : > { %v485_v43 = vpop.f32.mrf.mxu2 }
  0xb0   : > { %v514_v44 = vpop.f32.mrf.mxu3 }
  0xb1   : > { %v515_v46 = vadd.f32 %v514_v44, %v485_v43 }
  0xb3   : > { %v546_v47 = vmul.f32 %v515_v46, %v515_v46  ;;  %v414_v48 = vpop.f32.mrf.mxu0  ;;  %v443_v49 = vpop.f32.mrf.mxu1 }
  0xb4   : > { %v453_v51 = vsub.f32 %v414_v48, %v443_v49 }
  0xb5   : > { %v550_v50 = vadd.f32 %v546_v47, %v538_v45 }
  0xb6   : > { %v539_v54 = vmul.f32 %v453_v51, %v453_v51 }
  0xb7   : > { %777 = vrsqrt.f32 %v550_v50  ;;  %v488_v52 = vpop.f32.mrf.mxu2  ;;  %vm561_vm0 = vcmp.eq.f32.partialorder %v550_v50, inf  ;;  %v564_v18 = vand.u32 2147483648, %v550_v50  ;;  %vm563_vm1 = vcmp.eq.f32.partialorder %v550_v50, 0.0 }
  0xb8   : > { %v517_v53 = vpop.f32.mrf.mxu3 }
  0xb9   : > { %v518_v55 = vadd.f32 %v517_v53, %v488_v52 }
  0xbb   : > { %v547_v56 = vmul.f32 %v518_v55, %v518_v55  ;;  %v417_v57 = vpop.f32.mrf.mxu0  ;;  %v446_v58 = vpop.f32.mrf.mxu1 }
  0xbc   : > { %v454_v61 = vsub.f32 %v417_v57, %v446_v58 }
  0xbd   : > { %v778_v59 = vpop.eup %777  ;;  %v551_v60 = vadd.f32 %v547_v56, %v539_v54 }
  0xbe   : > { %v555_v62 = vmul.f32 %v778_v59, %v550_v50  ;;  %v540_v2 = vmul.f32 %v454_v61, %v454_v61 }
  0xbf   : > { %779 = vrsqrt.f32 %v551_v60  ;;  %v491_v0 = vpop.f32.mrf.mxu2  ;;  %vm573_vm2 = vcmp.eq.f32.partialorder %v551_v60, inf  ;;  %v576_v32 = vand.u32 2147483648, %v551_v60  ;;  %vm575_vm3 = vcmp.eq.f32.partialorder %v551_v60, 0.0 }
  0xc0   : > { %v556_v63 = vmul.f32 %v778_v59, %v555_v62  ;;  %v520_v1 = vpop.f32.mrf.mxu3 }
  0xc1   : > { %v521_v3 = vadd.f32 %v520_v1, %v491_v0 }
  0xc2   : > { %v557_v4 = vmul.f32 0.5, %v556_v63 }
  0xc3   : > { %v548_v5 = vmul.f32 %v521_v3, %v521_v3  ;;  %v420_v7 = vpop.f32.mrf.mxu0  ;;  %v449_v8 = vpop.f32.mrf.mxu1 }
  0xc4   : > { %v558_v6 = vsub.f32 1.5, %v557_v4  ;;  %v455_v11 = vsub.f32 %v420_v7, %v449_v8 }
  0xc5   : > { %v780_v9 = vpop.eup %779  ;;  %v552_v10 = vadd.f32 %v548_v5, %v540_v2 }
  0xc6   : > { %v559_v12 = vmul.f32 %v778_v59, %v558_v6  ;;  %v567_v13 = vmul.f32 %v780_v9, %v551_v60  ;;  %v541_v19 = vmul.f32 %v455_v11, %v455_v11 }
  0xc7   : > { %781 = vrsqrt.f32 %v552_v10  ;;  %v494_v16 = vpop.f32.mrf.mxu2  ;;  %vm585_vm4 = vcmp.eq.f32.partialorder %v552_v10, inf  ;;  %v588_v42 = vand.u32 2147483648, %v552_v10  ;;  %vm587_vm5 = vcmp.eq.f32.partialorder %v552_v10, 0.0 }
  0xc8   : > { %v560_v14 = vmul.f32 %v559_v12, %v550_v50  ;;  %v568_v15 = vmul.f32 %v780_v9, %v567_v13  ;;  %v523_v17 = vpop.f32.mrf.mxu3 }
  0xc9   : > { %v524_v20 = vadd.f32 %v523_v17, %v494_v16 }
  0xca   : > { %v562_v21 = vsel %vm561_vm0, %v550_v50, %v560_v14  ;;  %v569_v22 = vmul.f32 0.5, %v568_v15 }
  0xcb   : > { %v565_v23 = vsel %vm563_vm1, %v564_v18, %v562_v21  ;;  %v549_v24 = vmul.f32 %v524_v20, %v524_v20 }
  0xcc   : > { %602 = vst [vmem:[%s977_s25] sm:$0xff] %v565_v23  ;;  %v570_v25 = vsub.f32 1.5, %v569_v22 }
  0xcd   : > { %v782_v26 = vpop.eup %781  ;;  %v553_v27 = vadd.f32 %v549_v24, %v541_v19 }
  0xce   : > { %v571_v28 = vmul.f32 %v780_v9, %v570_v25  ;;  %v579_v29 = vmul.f32 %v782_v26, %v552_v10 }
  0xcf   : > { %783 = vrsqrt.f32 %v553_v27  ;;  %vm597_vm6 = vcmp.eq.f32.partialorder %v553_v27, inf  ;;  %v600_v49 = vand.u32 2147483648, %v553_v27  ;;  %vm599_vm7 = vcmp.eq.f32.partialorder %v553_v27, 0.0 }
  0xd0   : > { %v572_v30 = vmul.f32 %v571_v28, %v551_v60  ;;  %v580_v31 = vmul.f32 %v782_v26, %v579_v29 }
  0xd2   : > { %v574_v33 = vsel %vm573_vm2, %v551_v60, %v572_v30  ;;  %v581_v34 = vmul.f32 0.5, %v580_v31 }
  0xd3   : > { %v577_v35 = vsel %vm575_vm3, %v576_v32, %v574_v33 }
  0xd4   : > { %603 = vst [vmem:[%s977_s25 + $0x8] sm:$0xff] %v577_v35  ;;  %v582_v36 = vsub.f32 1.5, %v581_v34 }
  0xd5   : > { %v784_v37 = vpop.eup %783 }
  0xd6   : > { %v583_v38 = vmul.f32 %v782_v26, %v582_v36  ;;  %v591_v39 = vmul.f32 %v784_v37, %v553_v27 }
  0xd8   : > { %v584_v40 = vmul.f32 %v583_v38, %v552_v10  ;;  %v592_v41 = vmul.f32 %v784_v37, %v591_v39 }
  0xda   : > { %v586_v43 = vsel %vm585_vm4, %v552_v10, %v584_v40  ;;  %v593_v44 = vmul.f32 0.5, %v592_v41 }
  0xdb   : > { %v589_v45 = vsel %vm587_vm5, %v588_v42, %v586_v43 }
  0xdc   : > { %604 = vst [vmem:[%s977_s25 + $0x10] sm:$0xff] %v589_v45  ;;  %v594_v46 = vsub.f32 1.5, %v593_v44 }
  0xde   : > { %v595_v47 = vmul.f32 %v784_v37, %v594_v46 }
  0xe0   : > { %v596_v48 = vmul.f32 %v595_v47, %v553_v27 }
  0xe2   : > { %v598_v50 = vsel %vm597_vm6, %v553_v27, %v596_v48 }
  0xe3   : > { %v601_v51 = vsel %vm599_vm7, %v600_v49, %v598_v50 }
  0xe4   : > { %605 = vst [vmem:[%s977_s25 + $0x18] sm:$0xff] %v601_v51 }
  0xe5 PF: > { %s14_s17 = sadd.s32 1, %s807_s17   ;;  %s997_s15 = smov %s803_s16 }
  0xe6   : > { %p11_p5 = scmp.ge.s32.totalorder %s14_s17, 4   ;;  %s998_s16 = smov %s1000_s18 }
  0xe8   :  { %13 = sbr.rel (!%p11_p5) target bundleno = 2 (0x2), region = 79 }

// kernel: model_forward.2
= control target key start
LH: loop header
LB: loop body
LE: loop exit
PB: predicated region body
PF: predicated region fallthrough
CT: control target
= control target key end

     0   :  { %s870_s18 = smov 0   ;;  %s872_s19 = smov 0   ;;  %s1026_s0 = inlined_call_operand.vmem [shape: f32[64,128], index: 0, kind: input, shape index: {}]   ;;  %s1027_s1 = inlined_call_operand.vmem [shape: f32[64,128], index: 1, kind: input, shape index: {}]   ;;  %s1028_s2 = inlined_call_operand.vmem [shape: f32[128,128], index: 2, kind: input, shape index: {}]   ;;  %s1029_s3 = inlined_call_operand.vmem [shape: f32[128,128], index: 3, kind: input, shape index: {}]   ;;  %s1030_s4 = inlined_call_operand.vmem [shape: f32[64,128], index: 4, kind: output, shape index: {0}]   ;;  %s1031_s5 = inlined_call_operand.vmem [shape: f32[64,128], index: 5, kind: output, shape index: {1}]  }
   0x1   :  { %s874_s20 = smov 0  }
   0x2 LB: > { %s35_s21 = sadd.s32 1, %s834_s19  ;;  %p781_p0 = scmp.ge.s32.totalorder %s838_s20, 1  ;;  %s838_s20 = sphi %s874_s20, %s16_s20   ;;  %s834_s19 = sphi %s872_s19, %s1033_s19   ;;  %s830_s18 = sphi %s870_s18, %s1032_s18  }
   0x3   : > { %p37_p1 = scmp.ge.s32.totalorder %s35_s21, 2  ;;  %p267_p2 = scmp.lt.s32.totalorder %s838_s20, 3 }
   0x5   : > { %s1035_s21 = smov (%p37_p1, %s35_s21), 0  ;;  %p268_p3 = pnand %p781_p0, %p267_p2 }
   0x6   : > { %s782_s8 = sshll.u32 (!%p268_p3), %s830_s18, 2 }
   0x7   : > { %271 = sbr.rel (%p268_p3) target bundleno = 204 (0xcc), region = 36  ;;  %p334_p4 = scmp.lt.s32.totalorder (!%p268_p3), %s782_s8, 7 }
   0xc   : > { %v422_v0 = vld [vmem:[%s1028_s2 + $0x78] sm:$0xff]  ;;  %v421_v2 = vld [vmem:[%s1028_s2 + $0x70] sm:$0xff]  ;;  %v420_v4 = vld [vmem:[%s1028_s2 + $0x68] sm:$0xff]  ;;  %s1037_s8 = smov (!%p334_p4, %s782_s8), 7 }
   0xd   : > { %v438_v1 = vld [vmem:[%s1029_s3 + $0x78] sm:$0xff]  ;;  %513 = vmatpush.msra.mxu2 %v422_v0  ;;  %v437_v3 = vld [vmem:[%s1029_s3 + $0x70] sm:$0xff]  ;;  %v436_v5 = vld [vmem:[%s1029_s3 + $0x68] sm:$0xff]  ;;  %472 = vmatpush.msra.mxu1 %v422_v0  ;;  %s969_s7 = sshll.u32 %s1037_s8, 3 }
   0xe   : > { %542 = vmatpush.msra.mxu3 %v438_v1  ;;  %443 = vmatpush.msra.mxu0 %v438_v1  ;;  %v419_v6 = vld [vmem:[%s1028_s2 + $0x60] sm:$0xff]  ;;  %v418_v8 = vld [vmem:[%s1028_s2 + $0x58] sm:$0xff]  ;;  %v417_v10 = vld [vmem:[%s1028_s2 + $0x50] sm:$0xff]  ;;  %s987_s17 = scalar_lea.vmem %s1027_s1, %s969_s7  ;;  %s993_s24 = scalar_lea.vmem %s1026_s0, %s969_s7 }
   0xf   : > { %514 = vmatpush.msra.mxu2 %v421_v2  ;;  %v435_v7 = vld [vmem:[%s1029_s3 + $0x60] sm:$0xff]  ;;  %473 = vmatpush.msra.mxu1 %v421_v2  ;;  %v434_v9 = vld [vmem:[%s1029_s3 + $0x58] sm:$0xff]  ;;  %v433_v11 = vld [vmem:[%s1029_s3 + $0x50] sm:$0xff]  ;;  %s376_s6 = scalar_lea.vmem %s1030_s4, %s969_s7  ;;  %s385_s11 = scalar_lea.vmem %s1031_s5, %s969_s7 }
  0x10   : > { %543 = vmatpush.msra.mxu3 %v437_v3  ;;  %444 = vmatpush.msra.mxu0 %v437_v3  ;;  %v416_v12 = vld [vmem:[%s1028_s2 + $0x48] sm:$0xff]  ;;  %v415_v14 = vld [vmem:[%s1028_s2 + $0x40] sm:$0xff]  ;;  %v414_v16 = vld [vmem:[%s1028_s2 + $0x38] sm:$0xff] }
  0x11   : > { %515 = vmatpush.msra.mxu2 %v420_v4  ;;  %474 = vmatpush.msra.mxu1 %v420_v4  ;;  %v432_v13 = vld [vmem:[%s1029_s3 + $0x48] sm:$0xff]  ;;  %v431_v15 = vld [vmem:[%s1029_s3 + $0x40] sm:$0xff]  ;;  %v430_v17 = vld [vmem:[%s1029_s3 + $0x38] sm:$0xff] }
  0x12   : > { %544 = vmatpush.msra.mxu3 %v436_v5  ;;  %445 = vmatpush.msra.mxu0 %v436_v5  ;;  %v413_v18 = vld [vmem:[%s1028_s2 + $0x30] sm:$0xff]  ;;  %v412_v20 = vld [vmem:[%s1028_s2 + $0x28] sm:$0xff]  ;;  %v411_v22 = vld [vmem:[%s1028_s2 + $0x20] sm:$0xff] }
  0x13   : > { %516 = vmatpush.msra.mxu2 %v419_v6  ;;  %475 = vmatpush.msra.mxu1 %v419_v6  ;;  %v429_v19 = vld [vmem:[%s1029_s3 + $0x30] sm:$0xff]  ;;  %v428_v21 = vld [vmem:[%s1029_s3 + $0x28] sm:$0xff]  ;;  %v427_v23 = vld [vmem:[%s1029_s3 + $0x20] sm:$0xff] }
  0x14   : > { %545 = vmatpush.msra.mxu3 %v435_v7  ;;  %446 = vmatpush.msra.mxu0 %v435_v7  ;;  %v410_v24 = vld [vmem:[%s1028_s2 + $0x18] sm:$0xff]  ;;  %v409_v26 = vld [vmem:[%s1028_s2 + $0x10] sm:$0xff]  ;;  %v408_v28 = vld [vmem:[%s1028_s2 + $0x8] sm:$0xff] }
  0x15   : > { %517 = vmatpush.msra.mxu2 %v418_v8  ;;  %476 = vmatpush.msra.mxu1 %v418_v8  ;;  %v426_v25 = vld [vmem:[%s1029_s3 + $0x18] sm:$0xff]  ;;  %v425_v27 = vld [vmem:[%s1029_s3 + $0x10] sm:$0xff]  ;;  %v424_v29 = vld [vmem:[%s1029_s3 + $0x8] sm:$0xff] }
  0x16   : > { %546 = vmatpush.msra.mxu3 %v434_v9  ;;  %447 = vmatpush.msra.mxu0 %v434_v9  ;;  %v407_v30 = vld [vmem:[%s1028_s2] sm:$0xff]  ;;  %v404_v34 = vld [vmem:[%s987_s17 + $0x8] sm:$0xff]  ;;  %v405_v36 = vld [vmem:[%s987_s17 + $0x10] sm:$0xff] }
  0x17   : > { %518 = vmatpush.msra.mxu2 %v417_v10  ;;  %477 = vmatpush.msra.mxu1 %v417_v10  ;;  %v423_v31 = vld [vmem:[%s1029_s3] sm:$0xff]  ;;  %v400_v35 = vld [vmem:[%s993_s24 + $0x8] sm:$0xff]  ;;  %v401_v37 = vld [vmem:[%s993_s24 + $0x10] sm:$0xff] }
  0x18   : > { %547 = vmatpush.msra.mxu3 %v433_v11  ;;  %448 = vmatpush.msra.mxu0 %v433_v11  ;;  %v403_v32 = vld [vmem:[%s987_s17] sm:$0xff]  ;;  %v406_v38 = vld [vmem:[%s987_s17 + $0x18] sm:$0xff] }
  0x19   : > { %519 = vmatpush.msra.mxu2 %v416_v12  ;;  %478 = vmatpush.msra.mxu1 %v416_v12  ;;  %v399_v33 = vld [vmem:[%s993_s24] sm:$0xff]  ;;  %v402_v39 = vld [vmem:[%s993_s24 + $0x18] sm:$0xff] }
  0x1a   : > { %548 = vmatpush.msra.mxu3 %v432_v13  ;;  %449 = vmatpush.msra.mxu0 %v432_v13 }
  0x1b   : > { %520 = vmatpush.msra.mxu2 %v415_v14  ;;  %479 = vmatpush.msra.mxu1 %v415_v14 }
  0x1c   : > { %549 = vmatpush.msra.mxu3 %v431_v15  ;;  %450 = vmatpush.msra.mxu0 %v431_v15 }
  0x1d   : > { %521 = vmatpush.msra.mxu2 %v414_v16  ;;  %480 = vmatpush.msra.mxu1 %v414_v16 }
  0x1e   : > { %550 = vmatpush.msra.mxu3 %v430_v17  ;;  %451 = vmatpush.msra.mxu0 %v430_v17 }
  0x1f   : > { %522 = vmatpush.msra.mxu2 %v413_v18  ;;  %481 = vmatpush.msra.mxu1 %v413_v18 }
  0x20   : > { %551 = vmatpush.msra.mxu3 %v429_v19  ;;  %452 = vmatpush.msra.mxu0 %v429_v19 }
  0x21   : > { %523 = vmatpush.msra.mxu2 %v412_v20  ;;  %482 = vmatpush.msra.mxu1 %v412_v20 }
  0x22   : > { %552 = vmatpush.msra.mxu3 %v428_v21  ;;  %453 = vmatpush.msra.mxu0 %v428_v21 }
  0x23   : > { %524 = vmatpush.msra.mxu2 %v411_v22  ;;  %483 = vmatpush.msra.mxu1 %v411_v22 }
  0x24   : > { %553 = vmatpush.msra.mxu3 %v427_v23  ;;  %454 = vmatpush.msra.mxu0 %v427_v23 }
  0x25   : > { %525 = vmatpush.msra.mxu2 %v410_v24  ;;  %484 = vmatpush.msra.mxu1 %v410_v24 }
  0x26   : > { %554 = vmatpush.msra.mxu3 %v426_v25  ;;  %455 = vmatpush.msra.mxu0 %v426_v25 }
  0x27   : > { %526 = vmatpush.msra.mxu2 %v409_v26  ;;  %485 = vmatpush.msra.mxu1 %v409_v26 }
  0x28   : > { %555 = vmatpush.msra.mxu3 %v425_v27  ;;  %456 = vmatpush.msra.mxu0 %v425_v27 }
  0x29   : > { %527 = vmatpush.msra.mxu2 %v408_v28  ;;  %486 = vmatpush.msra.mxu1 %v408_v28 }
  0x2a   : > { %556 = vmatpush.msra.mxu3 %v424_v29  ;;  %457 = vmatpush.msra.mxu0 %v424_v29 }
  0x2b   : > { %528 = vmatpush.msra.mxu2 %v407_v30  ;;  %487 = vmatpush.msra.mxu1 %v407_v30 }
  0x2c   : > { %557 = vmatpush.msra.mxu3 %v423_v31  ;;  %529 = vmatmul.f32.vlgmr.msra.gmra.mxu2 %v403_v32 }
  0x2d   : > { %558 = vmatmul.f32.vlgmr.msra.gmra.mxu3 %v399_v33  ;;  %458 = vmatpush.msra.mxu0 %v423_v31 }
  0x2e   : > { %459 = vmatmul.f32.vlgmr.msra.gmra.mxu0 %v403_v32  ;;  %488 = vmatmul.f32.vlgmr.msra.gmra.mxu1 %v399_v33 }
  0x34   : > { %532 = vmatmul.f32.gmra.mxu2 %v404_v34 }
  0x35   : > { %561 = vmatmul.f32.gmra.mxu3 %v400_v35 }
  0x36   : > { %462 = vmatmul.f32.gmra.mxu0 %v404_v34  ;;  %491 = vmatmul.f32.gmra.mxu1 %v400_v35 }
  0x3c   : > { %535 = vmatmul.f32.gmra.mxu2 %v405_v36 }
  0x3d   : > { %564 = vmatmul.f32.gmra.mxu3 %v401_v37 }
  0x3e   : > { %465 = vmatmul.f32.gmra.mxu0 %v405_v36  ;;  %494 = vmatmul.f32.gmra.mxu1 %v401_v37 }
  0x44   : > { %538 = vmatmul.f32.gmra.mxu2 %v406_v38 }
  0x45   : > { %567 = vmatmul.f32.gmra.mxu3 %v402_v39 }
  0x46   : > { %468 = vmatmul.f32.gmra.mxu0 %v406_v38  ;;  %497 = vmatmul.f32.gmra.mxu1 %v402_v39 }
  0xab   : > { %v460_v40 = vpop.f32.mrf.mxu0  ;;  %v489_v41 = vpop.f32.mrf.mxu1 }
  0xac   : > { %v490_v42 = vadd.f32 %v489_v41, %v460_v40 }
  0xae   : > { %587 = vst [vmem:[%s376_s6] sm:$0xff] %v490_v42 }
  0xaf   : > { %v530_v43 = vpop.f32.mrf.mxu2 }
  0xb0   : > { %v559_v44 = vpop.f32.mrf.mxu3 }
  0xb1   : > { %v571_v45 = vsub.f32 %v530_v43, %v559_v44 }
  0xb3   : > { %595 = vst [vmem:[%s385_s11] sm:$0xff] %v571_v45  ;;  %v463_v46 = vpop.f32.mrf.mxu0  ;;  %v492_v47 = vpop.f32.mrf.mxu1 }
  0xb4   : > { %v493_v48 = vadd.f32 %v492_v47, %v463_v46 }
  0xb6   : > { %588 = vst [vmem:[%s376_s6 + $0x8] sm:$0xff] %v493_v48 }
  0xb7   : > { %v533_v49 = vpop.f32.mrf.mxu2 }
  0xb8   : > { %v562_v50 = vpop.f32.mrf.mxu3 }
  0xb9   : > { %v572_v51 = vsub.f32 %v533_v49, %v562_v50 }
  0xbb   : > { %596 = vst [vmem:[%s385_s11 + $0x8] sm:$0xff] %v572_v51  ;;  %v466_v52 = vpop.f32.mrf.mxu0  ;;  %v495_v53 = vpop.f32.mrf.mxu1 }
  0xbc   : > { %v496_v54 = vadd.f32 %v495_v53, %v466_v52 }
  0xbe   : > { %589 = vst [vmem:[%s376_s6 + $0x10] sm:$0xff] %v496_v54 }
  0xbf   : > { %v536_v55 = vpop.f32.mrf.mxu2 }
  0xc0   : > { %v565_v56 = vpop.f32.mrf.mxu3 }
  0xc1   : > { %v573_v57 = vsub.f32 %v536_v55, %v565_v56 }
  0xc3   : > { %597 = vst [vmem:[%s385_s11 + $0x10] sm:$0xff] %v573_v57  ;;  %v469_v58 = vpop.f32.mrf.mxu0  ;;  %v498_v59 = vpop.f32.mrf.mxu1 }
  0xc4   : > { %v499_v60 = vadd.f32 %v498_v59, %v469_v58 }
  0xc6   : > { %590 = vst [vmem:[%s376_s6 + $0x18] sm:$0xff] %v499_v60 }
  0xc7   : > { %v539_v61 = vpop.f32.mrf.mxu2 }
  0xc8   : > { %v568_v62 = vpop.f32.mrf.mxu3 }
  0xc9   : > { %v574_v63 = vsub.f32 %v539_v61, %v568_v62 }
  0xcb   : > { %598 = vst [vmem:[%s385_s11 + $0x18] sm:$0xff] %v574_v63 }
  0xcc PF: > { %s16_s20 = sadd.s32 1, %s838_s20   ;;  %s1032_s18 = smov %s834_s19 }
  0xcd   : > { %p13_p5 = scmp.ge.s32.totalorder %s16_s20, 4   ;;  %s1033_s19 = smov %s1035_s21 }
  0xcf   :  { %15 = sbr.rel (!%p13_p5) target bundleno = 2 (0x2), region = 91 }

</bundles_post_ra>
